<compile_context>
chip_gen: v7x
topology: tpu7x:2x2x1
jax: 0.10.0
libtpu: 0.0.40
codegen_flags: <defaults>
</compile_context>

<pallas_src>
import functools

import jax
import jax.numpy as jnp
from jax import lax
from jax.experimental import pallas as pl
from jax.experimental.pallas import tpu as pltpu


def _triple_kernel(xim_ref, w1_ref, s1_ref, b1_ref, w2t_ref, s2_ref, b2_ref,
                   o_ref, *, H, W):
    """One grid step == one image.

    xim_ref : (1, H*W, 9*Cin) bf16  im2col of zero-padded concat(x1,x2,x3)
    w1_ref  : (9*Cin, C)      bf16  conv1 weights, row = (dh*3+dw)*Cin + ci
    s1/b1   : (1, C)          f32   folded BN1 scale / bias
    w2t_ref : (Cout, 9*C)     bf16  conv2 weights, col = (dh*3+dw)*C + c
    s2/b2   : (Cout, 1)       f32   folded BN2 scale / bias
    o_ref   : (1, Cout, H*W)  f32   output (lane-dense; reshaped to NCHW outside)
    """
    HW = H * W
    C = w1_ref.shape[1]

    # ---- conv1: one K=9*Cin GEMM on the MXU ----
    x = xim_ref[0]                                                   # (HW, 9*Cin)
    mid = jnp.dot(x, w1_ref[...], preferred_element_type=jnp.float32)  # (HW, C)
    mid = jnp.maximum(mid * s1_ref[...] + b1_ref[...], 0.0)            # BN1 + ReLU

    # ---- conv2: build im2col of mid in-kernel (SAME, zero pad), one GEMM ----
    mid_b = mid.astype(w2t_ref.dtype).reshape(H, W, C)
    zw = jnp.zeros((H, 1, C), mid_b.dtype)
    zh = jnp.zeros((1, W + 2, C), mid_b.dtype)
    mid_p = jnp.concatenate(
        [zh, jnp.concatenate([zw, mid_b, zw], axis=1), zh], axis=0)  # (H+2, W+2, C)
    cols = [mid_p[dh:dh + H, dw:dw + W, :]
            for dh in range(3) for dw in range(3)]
    mid_im = jnp.concatenate(cols, axis=-1).reshape(HW, 9 * C)       # (HW, 9*C)

    # out[co, m] = sum_k w2t[co, k] * mid_im[m, k]   -> (Cout, HW) lane-dense
    out = lax.dot_general(w2t_ref[...], mid_im,
                          dimension_numbers=(((1,), (1,)), ((), ())),
                          preferred_element_type=jnp.float32)
    y = jnp.maximum(out * s2_ref[...] + b2_ref[...], 0.0)            # BN2 + ReLU
    o_ref[...] = y[None].astype(o_ref.dtype)


@jax.jit
def triple_inter_action(x1, x2, x3, params):
    """NCHW in, NCHW out (matches the PyTorch module; BN in inference mode)."""
    x = jnp.concatenate([x1, x2, x3], axis=1)                 # (N, Cin, H, W)
    N, Cin, H, W = x.shape

    # NHWC + zero-pad + im2col -> (N, H*W, 9*Cin); tap-major then channel,
    # matching w1p = w1_hwio.reshape(9*Cin, C).
    x_nhwc = jnp.transpose(x, (0, 2, 3, 1)).astype(jnp.bfloat16)
    x_pad = jnp.pad(x_nhwc, ((0, 0), (1, 1), (1, 1), (0, 0)))
    cols = [x_pad[:, dh:dh + H, dw:dw + W, :]
            for dh in range(3) for dw in range(3)]
    xim = jnp.concatenate(cols, axis=-1).reshape(N, H * W, 9 * Cin)

    w1p = params["w1p"].astype(jnp.bfloat16)     # (9*Cin, C)
    w2t = params["w2t"].astype(jnp.bfloat16)     # (Cout, 9*C)
    s1, b1 = params["s1"], params["b1"]          # (1, C)    f32
    s2, b2 = params["s2"], params["b2"]          # (Cout, 1) f32
    K1, C = w1p.shape
    Cout = w2t.shape[0]

    kernel = functools.partial(_triple_kernel, H=H, W=W)

    out = pl.pallas_call(
        kernel,
        out_shape=jax.ShapeDtypeStruct((N, Cout, H * W), jnp.float32),
        grid_spec=pltpu.PrefetchScalarGridSpec(
            num_scalar_prefetch=0,
            grid=(N,),
            in_specs=[
                pl.BlockSpec((1, H * W, K1), lambda n: (n, 0, 0)),
                pl.BlockSpec((K1, C), lambda n: (0, 0)),
                pl.BlockSpec((1, C), lambda n: (0, 0)),
                pl.BlockSpec((1, C), lambda n: (0, 0)),
                pl.BlockSpec((Cout, 9 * C), lambda n: (0, 0)),
                pl.BlockSpec((Cout, 1), lambda n: (0, 0)),
                pl.BlockSpec((Cout, 1), lambda n: (0, 0)),
            ],
            out_specs=pl.BlockSpec((1, Cout, H * W), lambda n: (n, 0, 0)),
        ),
        compiler_params=pltpu.CompilerParams(
            dimension_semantics=("parallel",)),
    )(xim, w1p, s1, b1, w2t, s2, b2)

    return out.reshape(N, Cout, H, W)                         # NCHW


def make_params(key, inplanes=7, channels=64, outplanes=1, eps=1e-5):
    """Deterministic synthetic parameters (conv3x3 weights + folded BN)."""
    k = jax.random.split(key, 8)
    w1_hwio = 0.1 * jax.random.normal(k[0], (3, 3, inplanes, channels), jnp.float32)
    w2_hwio = 0.1 * jax.random.normal(k[1], (3, 3, channels, outplanes), jnp.float32)

    g1 = 1.0 + 0.1 * jax.random.normal(k[2], (channels,), jnp.float32)
    be1 = 0.1 * jax.random.normal(k[3], (channels,), jnp.float32)
    m1 = 0.1 * jax.random.normal(k[4], (channels,), jnp.float32)
    v1 = jnp.abs(1.0 + 0.1 * jax.random.normal(k[5], (channels,), jnp.float32))

    g2 = 1.0 + 0.1 * jax.random.normal(k[6], (outplanes,), jnp.float32)
    be2 = 0.1 * jax.random.normal(k[7], (outplanes,), jnp.float32)
    m2 = jnp.zeros((outplanes,), jnp.float32)
    v2 = jnp.ones((outplanes,), jnp.float32)

    s1 = g1 / jnp.sqrt(v1 + eps)
    b1 = be1 - m1 * s1
    s2 = g2 / jnp.sqrt(v2 + eps)
    b2 = be2 - m2 * s2

    # conv1 packed for im2col GEMM: row = (dh*3+dw)*Cin + ci
    w1p = w1_hwio.reshape(9 * inplanes, channels)
    # conv2 packed transposed: (Cout, 9*C), col = (dh*3+dw)*C + c
    w2t = jnp.transpose(w2_hwio.reshape(9 * channels, outplanes), (1, 0))

    return {
        "w1_hwio": w1_hwio, "w2_hwio": w2_hwio,
        "w1p": w1p, "w2t": w2t,
        "s1": s1.reshape(1, channels), "b1": b1.reshape(1, channels),
        "s2": s2.reshape(outplanes, 1), "b2": b2.reshape(outplanes, 1),
    }


def reference(x1, x2, x3, params, *, match_kernel_precision=True):
    """Pure-JAX reference (NCHW in/out). With match_kernel_precision=True the
    conv operands are rounded to bf16 (f32 accumulation), mirroring the kernel's
    mixed precision, so the comparison isolates structural correctness."""
    x = jnp.concatenate([x1, x2, x3], axis=1)
    x_nhwc = jnp.transpose(x, (0, 2, 3, 1)).astype(jnp.float32)
    w1, w2 = params["w1_hwio"], params["w2_hwio"]
    if match_kernel_precision:
        x_nhwc = x_nhwc.astype(jnp.bfloat16).astype(jnp.float32)
        w1 = w1.astype(jnp.bfloat16).astype(jnp.float32)
        w2 = w2.astype(jnp.bfloat16).astype(jnp.float32)
    dn = ("NHWC", "HWIO", "NHWC")
    o = lax.conv_general_dilated(x_nhwc, w1, (1, 1), "SAME", dimension_numbers=dn,
                                 precision=lax.Precision.HIGHEST)
    o = jnp.maximum(o * params["s1"].reshape(1, 1, 1, -1)
                    + params["b1"].reshape(1, 1, 1, -1), 0.0)
    if match_kernel_precision:
        o = o.astype(jnp.bfloat16).astype(jnp.float32)
    o = lax.conv_general_dilated(o, w2, (1, 1), "SAME", dimension_numbers=dn,
                                 precision=lax.Precision.HIGHEST)
    o = jnp.maximum(o * params["s2"].reshape(1, 1, 1, -1)
                    + params["b2"].reshape(1, 1, 1, -1), 0.0)
    return jnp.transpose(o, (0, 3, 1, 2))


if __name__ == "__main__":
    key = jax.random.PRNGKey(0)
    kx1, kx2, kx3, kp = jax.random.split(key, 4)

    # inplanes=7 total -> x1:3ch, x2:3ch, x3:1ch; batch=2, spatial=16x16 (NCHW)
    N, H, W = 2, 16, 16
    x1 = jax.random.normal(kx1, (N, 3, H, W), jnp.float32)
    x2 = jax.random.normal(kx2, (N, 3, H, W), jnp.float32)
    x3 = jax.random.normal(kx3, (N, 1, H, W), jnp.float32)

    params = make_params(kp, inplanes=7, channels=64, outplanes=1)

    out = jax.block_until_ready(triple_inter_action(x1, x2, x3, params))
    ref = jax.block_until_ready(reference(x1, x2, x3, params))

    assert out.shape == (N, 1, H, W), out.shape
    max_err = float(jnp.max(jnp.abs(out - ref)))
    assert jnp.allclose(out, ref, rtol=5e-3, atol=5e-3), max_err

    print("KERNEL_OK")
</pallas_src>

<mosaic_0001>
module attributes {stable_mosaic.version = 11 : i64} {
  func.func @_triple_kernel(%arg0: i32, %arg1: memref<1x256x63xbf16, #tpu.memory_space<vmem>>, %arg2: memref<63x64xbf16, #tpu.memory_space<vmem>>, %arg3: memref<1x64xf32, #tpu.memory_space<vmem>>, %arg4: memref<1x64xf32, #tpu.memory_space<vmem>>, %arg5: memref<1x576xbf16, #tpu.memory_space<vmem>>, %arg6: memref<1x1xf32, #tpu.memory_space<vmem>>, %arg7: memref<1x1xf32, #tpu.memory_space<vmem>>, %arg8: memref<1x1x256xf32, #tpu.memory_space<vmem>>) attributes {dimension_semantics = [#tpu.dimension_semantics<parallel>], iteration_bounds = array<i64: 2>, scalar_prefetch = 0 : i64, scratch_operands = 0 : i64, tpu.core_type = #tpu.core_type<tc>, window_params = [{transform_indices = @transform_0, window_bounds = array<i64: 1, 256, 63>}, {pipeline_mode = #tpu.pipeline_mode<synchronous>, transform_indices = @transform_1, window_bounds = array<i64: 63, 64>}, {pipeline_mode = #tpu.pipeline_mode<synchronous>, transform_indices = @transform_2, window_bounds = array<i64: 1, 64>}, {pipeline_mode = #tpu.pipeline_mode<synchronous>, transform_indices = @transform_3, window_bounds = array<i64: 1, 64>}, {pipeline_mode = #tpu.pipeline_mode<synchronous>, transform_indices = @transform_4, window_bounds = array<i64: 1, 576>}, {pipeline_mode = #tpu.pipeline_mode<synchronous>, transform_indices = @transform_5, window_bounds = array<i64: 1, 1>}, {pipeline_mode = #tpu.pipeline_mode<synchronous>, transform_indices = @transform_6, window_bounds = array<i64: 1, 1>}, {transform_indices = @transform_7, window_bounds = array<i64: 1, 1, 256>}]} {
    %c0 = arith.constant 0 : index
    %c0_0 = arith.constant 0 : index
    %c0_1 = arith.constant 0 : index
    %0 = vector.load %arg1[%c0, %c0_0, %c0_1] : memref<1x256x63xbf16, #tpu.memory_space<vmem>>, vector<1x256x63xbf16>
    %1 = vector.shape_cast %0 : vector<1x256x63xbf16> to vector<256x63xbf16>
    %c0_2 = arith.constant 0 : index
    %c0_3 = arith.constant 0 : index
    %2 = vector.load %arg2[%c0_2, %c0_3] : memref<63x64xbf16, #tpu.memory_space<vmem>>, vector<63x64xbf16>
    %cst = arith.constant dense<0.000000e+00> : vector<256x64xf32>
    %3 = tpu.matmul %1, %2, %cst {dimension_numbers = #tpu.dot_dimension_numbers<[1], [0], [0], [1], [0, 0, 1, 1], [], []>} : vector<256x63xbf16>, vector<63x64xbf16>, vector<256x64xf32> -> vector<256x64xf32>
    %c0_4 = arith.constant 0 : index
    %c0_5 = arith.constant 0 : index
    %4 = vector.load %arg3[%c0_4, %c0_5] : memref<1x64xf32, #tpu.memory_space<vmem>>, vector<1x64xf32>
    %5 = vector.broadcast %4 : vector<1x64xf32> to vector<256x64xf32>
    %6 = arith.mulf %3, %5 : vector<256x64xf32>
    %c0_6 = arith.constant 0 : index
    %c0_7 = arith.constant 0 : index
    %7 = vector.load %arg4[%c0_6, %c0_7] : memref<1x64xf32, #tpu.memory_space<vmem>>, vector<1x64xf32>
    %8 = vector.broadcast %7 : vector<1x64xf32> to vector<256x64xf32>
    %9 = arith.addf %6, %8 : vector<256x64xf32>
    %cst_8 = arith.constant 0.000000e+00 : f32
    %10 = vector.broadcast %cst_8 : f32 to vector<256x64xf32>
    %11 = arith.maximumf %9, %10 : vector<256x64xf32>
    %12 = arith.truncf %11 : vector<256x64xf32> to vector<256x64xbf16>
    %13 = vector.shape_cast %12 : vector<256x64xbf16> to vector<16x16x64xbf16>
    %cst_9 = arith.constant 0.000000e+00 : bf16
    %14 = vector.broadcast %cst_9 : bf16 to vector<16x1x64xbf16>
    %cst_10 = arith.constant 0.000000e+00 : bf16
    %15 = vector.broadcast %cst_10 : bf16 to vector<1x18x64xbf16>
    %16 = tpu.concatenate %14, %13, %14 in 1 : vector<16x1x64xbf16>, vector<16x16x64xbf16>, vector<16x1x64xbf16> -> vector<16x18x64xbf16>
    %17 = tpu.concatenate %15, %16, %15 in 0 : vector<1x18x64xbf16>, vector<16x18x64xbf16>, vector<1x18x64xbf16> -> vector<18x18x64xbf16>
    %18 = vector.extract_strided_slice %17 {offsets = [0, 0, 0], sizes = [16, 16, 64], strides = [1, 1, 1]} : vector<18x18x64xbf16> to vector<16x16x64xbf16>
    %19 = vector.extract_strided_slice %17 {offsets = [0, 1, 0], sizes = [16, 16, 64], strides = [1, 1, 1]} : vector<18x18x64xbf16> to vector<16x16x64xbf16>
    %20 = vector.extract_strided_slice %17 {offsets = [0, 2, 0], sizes = [16, 16, 64], strides = [1, 1, 1]} : vector<18x18x64xbf16> to vector<16x16x64xbf16>
    %21 = vector.extract_strided_slice %17 {offsets = [1, 0, 0], sizes = [16, 16, 64], strides = [1, 1, 1]} : vector<18x18x64xbf16> to vector<16x16x64xbf16>
    %22 = vector.extract_strided_slice %17 {offsets = [1, 1, 0], sizes = [16, 16, 64], strides = [1, 1, 1]} : vector<18x18x64xbf16> to vector<16x16x64xbf16>
    %23 = vector.extract_strided_slice %17 {offsets = [1, 2, 0], sizes = [16, 16, 64], strides = [1, 1, 1]} : vector<18x18x64xbf16> to vector<16x16x64xbf16>
    %24 = vector.extract_strided_slice %17 {offsets = [2, 0, 0], sizes = [16, 16, 64], strides = [1, 1, 1]} : vector<18x18x64xbf16> to vector<16x16x64xbf16>
    %25 = vector.extract_strided_slice %17 {offsets = [2, 1, 0], sizes = [16, 16, 64], strides = [1, 1, 1]} : vector<18x18x64xbf16> to vector<16x16x64xbf16>
    %26 = vector.extract_strided_slice %17 {offsets = [2, 2, 0], sizes = [16, 16, 64], strides = [1, 1, 1]} : vector<18x18x64xbf16> to vector<16x16x64xbf16>
    %27 = tpu.concatenate %18, %19, %20, %21, %22, %23, %24, %25, %26 in 2 : vector<16x16x64xbf16>, vector<16x16x64xbf16>, vector<16x16x64xbf16>, vector<16x16x64xbf16>, vector<16x16x64xbf16>, vector<16x16x64xbf16>, vector<16x16x64xbf16>, vector<16x16x64xbf16>, vector<16x16x64xbf16> -> vector<16x16x576xbf16>
    %28 = vector.shape_cast %27 : vector<16x16x576xbf16> to vector<256x576xbf16>
    %c0_11 = arith.constant 0 : index
    %c0_12 = arith.constant 0 : index
    %29 = vector.load %arg5[%c0_11, %c0_12] : memref<1x576xbf16, #tpu.memory_space<vmem>>, vector<1x576xbf16>
    %cst_13 = arith.constant dense<0.000000e+00> : vector<1x256xf32>
    %30 = tpu.matmul %29, %28, %cst_13 {dimension_numbers = #tpu.dot_dimension_numbers<[1], [1], [0], [0], [0, 0, 1, 0], [], []>} : vector<1x576xbf16>, vector<256x576xbf16>, vector<1x256xf32> -> vector<1x256xf32>
    %c0_14 = arith.constant 0 : index
    %c0_15 = arith.constant 0 : index
    %31 = vector.load %arg6[%c0_14, %c0_15] : memref<1x1xf32, #tpu.memory_space<vmem>>, vector<1x1xf32>
    %32 = vector.broadcast %31 : vector<1x1xf32> to vector<1x256xf32>
    %33 = arith.mulf %30, %32 : vector<1x256xf32>
    %c0_16 = arith.constant 0 : index
    %c0_17 = arith.constant 0 : index
    %34 = vector.load %arg7[%c0_16, %c0_17] : memref<1x1xf32, #tpu.memory_space<vmem>>, vector<1x1xf32>
    %35 = vector.broadcast %34 : vector<1x1xf32> to vector<1x256xf32>
    %36 = arith.addf %33, %35 : vector<1x256xf32>
    %cst_18 = arith.constant 0.000000e+00 : f32
    %37 = vector.broadcast %cst_18 : f32 to vector<1x256xf32>
    %38 = arith.maximumf %36, %37 : vector<1x256xf32>
    %39 = vector.shape_cast %38 : vector<1x256xf32> to vector<1x1x256xf32>
    %c0_19 = arith.constant 0 : index
    %c0_20 = arith.constant 0 : index
    %c0_21 = arith.constant 0 : index
    %40 = vector.load %arg8[%c0_19, %c0_20, %c0_21] : memref<1x1x256xf32, #tpu.memory_space<vmem>>, vector<1x1x256xf32>
    tpu.vector_store %arg8[%c0_19, %c0_20, %c0_21], %39 {strides = array<i32>} : memref<1x1x256xf32, #tpu.memory_space<vmem>>, vector<1x1x256xf32>,
    return
  }
  func.func @transform_0(%arg0: i32) -> (i32, i32, i32) {
    %c0_i32 = arith.constant 0 : i32
    %c0_i32_0 = arith.constant 0 : i32
    %c0_i32_1 = arith.constant 0 : i32
    return %arg0, %c0_i32, %c0_i32_0 : i32, i32, i32
  }
  func.func @transform_1(%arg0: i32) -> (i32, i32) {
    %c0_i32 = arith.constant 0 : i32
    %c0_i32_0 = arith.constant 0 : i32
    %c0_i32_1 = arith.constant 0 : i32
    return %c0_i32, %c0_i32_0 : i32, i32
  }
  func.func @transform_2(%arg0: i32) -> (i32, i32) {
    %c0_i32 = arith.constant 0 : i32
    %c0_i32_0 = arith.constant 0 : i32
    %c0_i32_1 = arith.constant 0 : i32
    return %c0_i32, %c0_i32_0 : i32, i32
  }
  func.func @transform_3(%arg0: i32) -> (i32, i32) {
    %c0_i32 = arith.constant 0 : i32
    %c0_i32_0 = arith.constant 0 : i32
    %c0_i32_1 = arith.constant 0 : i32
    return %c0_i32, %c0_i32_0 : i32, i32
  }
  func.func @transform_4(%arg0: i32) -> (i32, i32) {
    %c0_i32 = arith.constant 0 : i32
    %c0_i32_0 = arith.constant 0 : i32
    %c0_i32_1 = arith.constant 0 : i32
    return %c0_i32, %c0_i32_0 : i32, i32
  }
  func.func @transform_5(%arg0: i32) -> (i32, i32) {
    %c0_i32 = arith.constant 0 : i32
    %c0_i32_0 = arith.constant 0 : i32
    %c0_i32_1 = arith.constant 0 : i32
    return %c0_i32, %c0_i32_0 : i32, i32
  }
  func.func @transform_6(%arg0: i32) -> (i32, i32) {
    %c0_i32 = arith.constant 0 : i32
    %c0_i32_0 = arith.constant 0 : i32
    %c0_i32_1 = arith.constant 0 : i32
    return %c0_i32, %c0_i32_0 : i32, i32
  }
  func.func @transform_7(%arg0: i32) -> (i32, i32, i32) {
    %c0_i32 = arith.constant 0 : i32
    %c0_i32_0 = arith.constant 0 : i32
    %c0_i32_1 = arith.constant 0 : i32
    return %arg0, %c0_i32, %c0_i32_0 : i32, i32, i32
  }
}

</mosaic_0001>

<bundles_post_ra>
// kernel: triple_inter_action.1
= control target key start
LH: loop header
LB: loop body
LE: loop exit
PB: predicated region body
PF: predicated region fallthrough
CT: control target
= control target key end

     0   :  { %s2055_s28 = smov 0   ;;  %s2844_s0 = inlined_call_operand.vmem [shape: bf16[2,256,63], index: 0, kind: input, shape index: {}]   ;;  %s2845_s1 = inlined_call_operand.vmem [shape: bf16[63,64], index: 1, kind: input, shape index: {}]   ;;  %s2846_s2 = inlined_call_operand.vmem [shape: f32[1,64], index: 2, kind: input, shape index: {}]   ;;  %s2847_s3 = inlined_call_operand.vmem [shape: f32[1,64], index: 3, kind: input, shape index: {}]   ;;  %s2848_s4 = inlined_call_operand.vmem [shape: bf16[1,576], index: 4, kind: input, shape index: {}]   ;;  %s2849_s5 = inlined_call_operand.<no memory space> [shape: f32[1,1], index: 5, kind: input, shape index: {}]   ;;  %s2850_s7 = inlined_call_operand.vmem [shape: f32[2,1,256], index: 7, kind: output, shape index: {}]   ;;  %s2851_s6 = inlined_call_operand.<no memory space> [shape: f32[1,1], index: 6, kind: input, shape index: {}]  }
   0x1   :  { %v12_v0 = vstv %s2849_s5  ;;  %v14_v1 = vstv %s2851_s6 }
   0x2   :  { %13 = vst [vmem:[#allocation2] sm:$0x1] %v12_v0  ;;  %15 = vst [vmem:[#allocation3] sm:$0x1] %v14_v1 }
   0x3 LB: > { %s1816_s29 = sadd.s32 4294967295, %s2003_s28   ;;  %p1820_p0 = scmp.ge.s32.totalorder %s2003_s28, 1  ;;  %s2003_s28 = sphi %s2055_s28, %s21_s28  }
   0x4   : > { %p241_p1 = scmp.lt.s32.totalorder %s2003_s28, 3 }
   0x6   : > { %p242_p2 = pnand %p1820_p0, %p241_p1 }
   0x8   : > { %245 = sbr.rel (%p242_p2) target bundleno = 815 (0x32f), region = 48 }
   0xf   : > { %v1976_v2 = vld [vmem:[%s2845_s1] sm:$0xff]   ;;  %vm474_vm0 = vcmask 1046528   ;;  %v1977_v3 = vld [vmem:[%s2845_s1 + $0x8] sm:$0xff]   ;;  %vm475_vm1 = vcmask 1047552   ;;  %v2005_v4 = vmov 65535   ;;  %v1978_v6 = vld [vmem:[%s2845_s1 + $0x10] sm:$0xff]  }
  0x10   : > { %1908 = vmatprep.subr.bf16.mxu0 %v1976_v2  ;;  %v476_v5 = vsel %vm474_vm0, 4294967295, %v2005_v4  ;;  %v1979_v7 = vld [vmem:[%s2845_s1 + $0x18] sm:$0xff]   ;;  %p272_p3 = scmp.lt.s32.totalorder %s1816_s29, 1  ;;  %vm425_vm2 = vcmask 515072   ;;  %v2006_v26 = vmov 0   ;;  %vm912_vm3 = vcmask 1040384  }
  0x11   : > { %1909 = vmatpush3.bf16.msra.mxu0 %v1976_v2  ;;  %v477_v8 = vsel %vm475_vm1, %v476_v5, 0  ;;  %1974 = vset.pattern.permute.xlu1 %v2006_v26  ;;  %v2119_v27 = vld [vmem:[%s2846_s2] ss:$0 sm:$0xff]  ;;  %vm913_vm4 = vsmask.f32 256  ;;  %v2146_v2 = vrot.slane %v2006_v26, 1 }
  0x12   : > { %1910 = vmatprep.subr.bf16.mxu0 %v1977_v3  ;;  %s2862_s29 = smov (!%p272_p3, %s1816_s29), 1  ;;  %v479_v9 = vand.u32 %v1979_v7, %v477_v8  ;;  %1975 = vset.pattern.permute.xlu0 %v2006_v26  ;;  %v2124_v29 = vld [vmem:[%s2847_s3] ss:$0 sm:$0xff]  ;;  %vm2138_vm5 = vmand %vm912_vm3, %vm913_vm4  ;;  %vm947_vm6 = vsmask.f32 7424  ;;  %s2007_s21 = smov 64  }
  0x13   : > { %s1869_s13 = sshll.u32 %s2862_s29, 7  ;;  %vm1330_vm7 = vcmask 523264   ;;  %s1823_s24 = sshll.u32 %s2862_s29, 1 }
  0x14   : > { %s2082_s16 = scalar_lea.vmem %s2844_s0, %s1869_s13  ;;  %vm2671_vm8 = vmneg %vm1330_vm7  ;;  %s280_s27 = scalar_lea.vmem %s2850_s7, %s1823_s24 }
  0x15   : > { %1911 = vmatpush3.bf16.msra.mxu0 %v1977_v3  ;;  %v1980_v10 = vld [vmem:[%s2082_s16] sm:$0xff]   ;;  %v1981_v11 = vld [vmem:[%s2082_s16 + $0x8] sm:$0xff]   ;;  %v1982_v12 = vld [vmem:[%s2082_s16 + $0x10] sm:$0xff]  }
  0x16   : > { %1912 = vmatprep.subr.bf16.mxu0 %v1978_v6  ;;  %1916 = vmatprep.mubr.msk.bf16.mxu0 %vm425_vm2, %v1980_v10  ;;  %v1983_v13 = vld [vmem:[%s2082_s16 + $0x18] sm:$0xff]   ;;  %v1984_v14 = vld [vmem:[%s2082_s16 + $0x20] sm:$0xff]   ;;  %v1985_v15 = vld [vmem:[%s2082_s16 + $0x28] sm:$0xff]  }
  0x17   : > { %v1986_v16 = vld [vmem:[%s2082_s16 + $0x30] sm:$0xff]   ;;  %v1987_v17 = vld [vmem:[%s2082_s16 + $0x38] sm:$0xff]   ;;  %v1988_v18 = vld [vmem:[%s2082_s16 + $0x40] sm:$0xff]  }
  0x18   : > { %v1989_v19 = vld [vmem:[%s2082_s16 + $0x48] sm:$0xff]   ;;  %v1990_v20 = vld [vmem:[%s2082_s16 + $0x50] sm:$0xff]   ;;  %v1991_v21 = vld [vmem:[%s2082_s16 + $0x58] sm:$0xff]  }
  0x19   : > { %1913 = vmatpush3.bf16.msra.mxu0 %v1978_v6  ;;  %v1992_v22 = vld [vmem:[%s2082_s16 + $0x60] sm:$0xff]   ;;  %v1993_v23 = vld [vmem:[%s2082_s16 + $0x68] sm:$0xff]   ;;  %v1994_v24 = vld [vmem:[%s2082_s16 + $0x70] sm:$0xff]  }
  0x1a   : > { %1914 = vmatprep.subr.bf16.mxu0 %v479_v9  ;;  %v1995_v25 = vld [vmem:[%s2082_s16 + $0x78] sm:$0xff]  }
  0x1d   : > { %1915 = vmatpush3.bf16.msra.mxu0 %v479_v9 }
  0x20   : > { %1917 = vmatmul.mubr.msk.bf16.vlgmr.msra.gmra.mrb[0].mxu0 %vm425_vm2, %v1981_v11 }
  0x21   : > { %1920 = vmatprep.mubr.msk.bf16.mxu0 %vm425_vm2, %v1982_v12 }
  0x28   : > { %1921 = vmatmul.mubr.msk.bf16.gmra.mrb[4].mxu0 %vm425_vm2, %v1983_v13 }
  0x29   : > { %1924 = vmatprep.mubr.msk.bf16.mxu0 %vm425_vm2, %v1984_v14 }
  0x30   : > { %1925 = vmatmul.mubr.msk.bf16.gmra.mrb[8].mxu0 %vm425_vm2, %v1985_v15 }
  0x31   : > { %1928 = vmatprep.mubr.msk.bf16.mxu0 %vm425_vm2, %v1986_v16 }
  0x38   : > { %1929 = vmatmul.mubr.msk.bf16.gmra.mrb[12].mxu0 %vm425_vm2, %v1987_v17 }
  0x39   : > { %1932 = vmatprep.mubr.msk.bf16.mxu0 %vm425_vm2, %v1988_v18 }
  0x40   : > { %1933 = vmatmul.mubr.msk.bf16.gmra.mrb[16].mxu0 %vm425_vm2, %v1989_v19 }
  0x41   : > { %1936 = vmatprep.mubr.msk.bf16.mxu0 %vm425_vm2, %v1990_v20 }
  0x48   : > { %1937 = vmatmul.mubr.msk.bf16.gmra.mrb[20].mxu0 %vm425_vm2, %v1991_v21 }
  0x49   : > { %1940 = vmatprep.mubr.msk.bf16.mxu0 %vm425_vm2, %v1992_v22 }
  0x50   : > { %1941 = vmatmul.mubr.msk.bf16.gmra.mrb[24].mxu0 %vm425_vm2, %v1993_v23 }
  0x51   : > { %1944 = vmatprep.mubr.msk.bf16.mxu0 %vm425_vm2, %v1994_v24 }
  0x58   : > { %1945 = vmatmul.mubr.msk.bf16.gmra.mrb[28].mxu0 %vm425_vm2, %v1995_v25 }
  0xf3   : > { %v1918_v28 = vpop.f32.mrb[0].mxu0 }
  0xf4   : > { %v651_v30 = vmul.f32 %v1918_v28, %v2119_v27  ;;  %v515_v31 = vpop.f32.mrb[1].mxu0 }
  0xf5   : > { %v649_v32 = vmul.f32 %v2119_v27, %v515_v31  ;;  %v1919_v33 = vpop.f32.mrb[2].mxu0 }
  0xf6   : > { %v690_v34 = vadd.f32 %v2124_v29, %v651_v30  ;;  %v652_v35 = vmul.f32 %v1919_v33, %v2119_v27  ;;  %v518_v36 = vpop.f32.mrb[3].mxu0 }
  0xf7   : > { %v688_v37 = vadd.f32 %v2124_v29, %v649_v32  ;;  %v650_v38 = vmul.f32 %v2119_v27, %v518_v36 }
  0xf8   : > { %v691_v39 = vadd.f32 %v2124_v29, %v652_v35  ;;  %v722_v41 = vmax.f32 %v690_v34, 0.0 }
  0xf9   : > { %v689_v40 = vadd.f32 %v2124_v29, %v650_v38  ;;  %v720_v43 = vmax.f32 %v688_v37, 0.0 }
  0xfa   : > { %v723_v42 = vmax.f32 %v691_v39, 0.0 }
  0xfb   : > { %v721_v44 = vmax.f32 %v689_v40, 0.0  ;;  %v1922_v45 = vpop.f32.mrb[4].mxu0 }
  0xfc   : > { %v753_v46 = vpack.c.bf16 %v723_v42, %v722_v41  ;;  %v655_v47 = vmul.f32 %v1922_v45, %v2119_v27  ;;  %v531_v48 = vpop.f32.mrb[5].mxu0 }
  0xfd   : > { %v752_v49 = vpack.c.bf16 %v721_v44, %v720_v43  ;;  %v653_v50 = vmul.f32 %v2119_v27, %v531_v48  ;;  %v1923_v51 = vpop.f32.mrb[6].mxu0 }
  0xfe   : > { %v776_v52 = vshrl.u32 %v753_v46, 16  ;;  %v694_v53 = vadd.f32 %v2124_v29, %v655_v47  ;;  %v656_v54 = vmul.f32 %v1923_v51, %v2119_v27  ;;  %v534_v55 = vpop.f32.mrb[7].mxu0  ;;  %v779_v61 = vshll.u32 %v753_v46, 16 }
  0xff   : > { %v769_v57 = vshrl.u32 %v752_v49, 16  ;;  %v692_v58 = vadd.f32 %v2124_v29, %v653_v50  ;;  %v654_v59 = vmul.f32 %v2119_v27, %v534_v55  ;;  %v772_v0 = vshll.u32 %v752_v49, 16 }
 0x100   : > { %v778_v60 = vrot.slane %v776_v52, 7  ;;  %v695_v62 = vadd.f32 %v2124_v29, %v656_v54  ;;  %v726_v4 = vmax.f32 %v694_v53, 0.0 }
 0x101   : > { %v771_v63 = vrot.slane %v769_v57, 7  ;;  %v693_v1 = vadd.f32 %v2124_v29, %v654_v59  ;;  %v724_v8 = vmax.f32 %v692_v58, 0.0 }
 0x102   : > { %v781_v3 = vor.u32 %v779_v61, %v778_v60  ;;  %v727_v5 = vmax.f32 %v695_v62, 0.0  ;;  %v2150_v6 = vsel %vm2138_vm5, %v778_v60, 0 }
 0x103   : > { %v774_v7 = vor.u32 %v772_v0, %v771_v63  ;;  %v725_v9 = vmax.f32 %v693_v1, 0.0  ;;  %v1926_v10 = vpop.f32.mrb[8].mxu0  ;;  %v2154_v11 = vsel %vm2138_vm5, %v771_v63, 0  ;;  %v976_v16 = vshll.u32 %v2150_v6, 16 }
 0x104   : > { %v2158_v12 = vsel %vm2138_vm5, 0, %v781_v3  ;;  %v755_v13 = vpack.c.bf16 %v727_v5, %v726_v4  ;;  %v659_v14 = vmul.f32 %v1926_v10, %v2119_v27  ;;  %v547_v15 = vpop.f32.mrb[9].mxu0  ;;  %v1203_v21 = vrot.slane %v2154_v11, 1 }
 0x105   : > { %v2164_v17 = vsel %vm2138_vm5, 0, %v774_v7  ;;  %v754_v18 = vpack.c.bf16 %v725_v9, %v724_v8  ;;  %v657_v19 = vmul.f32 %v2119_v27, %v547_v15  ;;  %v1927_v20 = vpop.f32.mrb[10].mxu0  ;;  %v969_v26 = vshrl.u32 %v2158_v12, 16 }
 0x106   : > { %v790_v22 = vshrl.u32 %v755_v13, 16  ;;  %v698_v23 = vadd.f32 %v2124_v29, %v659_v14  ;;  %v660_v24 = vmul.f32 %v1927_v20, %v2119_v27  ;;  %v550_v25 = vpop.f32.mrb[11].mxu0  ;;  %v793_v28 = vshll.u32 %v755_v13, 16 }
 0x107   : > { %v783_v30 = vshrl.u32 %v754_v18, 16  ;;  %v696_v31 = vadd.f32 %v2124_v29, %v657_v19  ;;  %v658_v32 = vmul.f32 %v2119_v27, %v550_v25  ;;  %v971_v36 = vshll.u32 %v2158_v12, 16 }
 0x108   : > { %v792_v33 = vrot.slane %v790_v22, 7  ;;  %v730_v34 = vmax.f32 %v698_v23, 0.0  ;;  %v699_v35 = vadd.f32 %v2124_v29, %v660_v24  ;;  %v786_v38 = vshll.u32 %v754_v18, 16 }
 0x109   : > { %v785_v37 = vrot.slane %v783_v30, 7  ;;  %v728_v39 = vmax.f32 %v696_v31, 0.0  ;;  %v697_v40 = vadd.f32 %v2124_v29, %v658_v32  ;;  %v973_v43 = vrot.slane %v971_v36, 1 }
 0x10a   : > { %v795_v41 = vor.u32 %v793_v28, %v792_v33  ;;  %v731_v42 = vmax.f32 %v699_v35, 0.0  ;;  %v978_v44 = vrot.slane %v976_v16, 1  ;;  %v1202_v48 = vrot.slane %v2164_v17, 1 }
 0x10b   : > { %v788_v45 = vor.u32 %v786_v38, %v785_v37  ;;  %v729_v46 = vmax.f32 %v697_v40, 0.0  ;;  %v1930_v47 = vpop.f32.mrb[12].mxu0  ;;  %v2179_v49 = vsel %vm2138_vm5, %v792_v33, 0  ;;  %v974_v52 = vor.u32 %v973_v43, %v969_v26 }
 0x10c   : > { %v757_v50 = vpack.c.bf16 %v731_v42, %v730_v34  ;;  %v663_v51 = vmul.f32 %v1930_v47, %v2119_v27  ;;  %v563_v53 = vpop.f32.mrb[13].mxu0  ;;  %v2184_v54 = vsel %vm2138_vm5, %v785_v37, 0  ;;  %v2188_v55 = vsel %vm2138_vm5, 0, %v795_v41 }
 0x10d   : > { %v2192_v57 = vsel %vm2138_vm5, 0, %v788_v45  ;;  %v756_v58 = vpack.c.bf16 %v729_v46, %v728_v39  ;;  %v661_v59 = vmul.f32 %v2119_v27, %v563_v53  ;;  %v1931_v60 = vpop.f32.mrb[14].mxu0  ;;  %v2197_v0 = vsel %vm947_vm6, %v974_v52, %v978_v44 }
 0x10e   : > { %v804_v61 = vshrl.u32 %v757_v50, 16  ;;  %v807_v62 = vshll.u32 %v757_v50, 16  ;;  %v702_v63 = vadd.f32 %v2124_v29, %v663_v51  ;;  %v566_v1 = vpop.f32.mrb[15].mxu0  ;;  %1140 = vrot.lane.b32.xlu0 %v2197_v0, %s2007_s21  ;;  %v664_v5 = vmul.f32 %v1931_v60, %v2119_v27 }
 0x10f   : > { %v797_v3 = vshrl.u32 %v756_v58, 16  ;;  %v700_v4 = vadd.f32 %v2124_v29, %v661_v59  ;;  %v2204_v7 = vsel %vm474_vm0, %v1202_v48, %v1203_v21  ;;  %v800_v9 = vshll.u32 %v756_v58, 16 }
 0x110   : > { %v2206_v8 = vrot.slane %v804_v61, 7  ;;  %v734_v10 = vmax.f32 %v702_v63, 0.0  ;;  %v662_v13 = vmul.f32 %v2119_v27, %v566_v1  ;;  %v703_v15 = vadd.f32 %v2124_v29, %v664_v5 }
 0x111   : > { %v799_v14 = vrot.slane %v797_v3, 7  ;;  %v993_v16 = vshrl.u32 %v2188_v55, 16  ;;  %v995_v18 = vshll.u32 %v2188_v55, 16  ;;  %v732_v20 = vmax.f32 %v700_v4, 0.0 }
 0x112   : > { %v809_v19 = vor.u32 %v807_v62, %v2206_v8  ;;  %v701_v22 = vadd.f32 %v2124_v29, %v662_v13  ;;  %v1000_v21 = vshll.u32 %v2179_v49, 16  ;;  %v735_v23 = vmax.f32 %v703_v15, 0.0  ;;  %1296 = vrot.lane.b32.xlu0 %v2204_v7, %s2007_s21 }
 0x113   : > { %v1934_v24 = vpop.f32.mrb[16].mxu0  ;;  %v997_v25 = vrot.slane %v995_v18, 1  ;;  %v981_v26 = vshrl.u32 %v2192_v57, 16  ;;  %v983_v28 = vshll.u32 %v2192_v57, 16  ;;  %v802_v31 = vor.u32 %v800_v9, %v799_v14 }
 0x114   : > { %v2221_v30 = vsel %vm2138_vm5, 0, %v809_v19  ;;  %v733_v32 = vmax.f32 %v701_v22, 0.0  ;;  %v667_v33 = vmul.f32 %v1934_v24, %v2119_v27  ;;  %v579_v34 = vpop.f32.mrb[17].mxu0  ;;  %v759_v35 = vpack.c.bf16 %v735_v23, %v734_v10 }
 0x115   : > { %v998_v36 = vor.u32 %v997_v25, %v993_v16  ;;  %v1002_v37 = vrot.slane %v1000_v21, 1  ;;  %v665_v38 = vmul.f32 %v2119_v27, %v579_v34  ;;  %v1935_v39 = vpop.f32.mrb[18].mxu0  ;;  %v985_v42 = vrot.slane %v983_v28, 1 }
 0x116   : > { %v758_v40 = vpack.c.bf16 %v733_v32, %v732_v20  ;;  %v706_v41 = vadd.f32 %v2124_v29, %v667_v33  ;;  %v988_v43 = vshll.u32 %v2184_v54, 16  ;;  %v582_v44 = vpop.f32.mrb[19].mxu0  ;;  %v818_v45 = vshrl.u32 %v759_v35, 16 }
 0x117   : > { %v821_v46 = vshll.u32 %v759_v35, 16  ;;  %v2228_v47 = vsel %vm947_vm6, %v998_v36, %v1002_v37  ;;  %v704_v48 = vadd.f32 %v2124_v29, %v665_v38  ;;  %v2233_v50 = vsel %vm2138_vm5, 0, %v802_v31 }
 0x118   : > { %v811_v51 = vshrl.u32 %v758_v40, 16  ;;  %v814_v52 = vshll.u32 %v758_v40, 16  ;;  %1144 = vrot.lane.b32.xlu0 %v2228_v47, %s2007_s21  ;;  %v986_v53 = vor.u32 %v985_v42, %v981_v26  ;;  %v2237_v58 = vrot.slane %v818_v45, 7 }
 0x119   : > { %v738_v59 = vmax.f32 %v706_v41, 0.0  ;;  %v990_v60 = vrot.slane %v988_v43, 1  ;;  %v668_v61 = vmul.f32 %v1935_v39, %v2119_v27  ;;  %v666_v63 = vmul.f32 %v2119_v27, %v582_v44 }
 0x11a   : > { %v2240_v62 = vrot.slane %v811_v51, 7  ;;  %v1205_v1 = vrot.slane %v2158_v12, 1  ;;  %v1206_v3 = vrot.slane %v2150_v6, 1  ;;  %v823_v4 = vor.u32 %v821_v46, %v2237_v58 }
 0x11b   : > { %v736_v5 = vmax.f32 %v704_v48, 0.0  ;;  %v2247_v9 = vsel %vm947_vm6, %v986_v53, %v990_v60  ;;  %v707_v10 = vadd.f32 %v2124_v29, %v668_v61  ;;  %v1938_v13 = vpop.f32.mrb[20].mxu0  ;;  %v705_v16 = vadd.f32 %v2124_v29, %v666_v63 }
 0x11c   : > { %v816_v15 = vor.u32 %v814_v52, %v2240_v62  ;;  %1142 = vrot.lane.b32.xlu1 %v2247_v9, %s2007_s21  ;;  %v2255_v18 = vsel %vm474_vm0, %v1205_v1, %v1206_v3  ;;  %v1208_v6 = vrot.slane %v2192_v57, 1  ;;  %v595_v19 = vpop.f32.mrb[21].mxu0  ;;  %v2260_v20 = vsel %vm2138_vm5, 0, %v823_v4 }
 0x11d   : > { %v739_v22 = vmax.f32 %v707_v10, 0.0  ;;  %v1209_v21 = vrot.slane %v2184_v54, 1  ;;  %v935_v23 = vsel %vm2138_vm5, %v799_v14, 0  ;;  %v1939_v24 = vpop.f32.mrb[22].mxu0  ;;  %v737_v26 = vmax.f32 %v705_v16, 0.0 }
 0x11e   : > { %v2267_v25 = vsel %vm2138_vm5, 0, %v816_v15  ;;  %v1005_v28 = vshrl.u32 %v2233_v50, 16  ;;  %v1007_v31 = vshll.u32 %v2233_v50, 16  ;;  %v598_v32 = vpop.f32.mrb[23].mxu0  ;;  %v1012_v34 = vshll.u32 %v935_v23, 16 }
 0x11f   : > { %v761_v33 = vpack.c.bf16 %v739_v22, %v738_v59  ;;  %v671_v35 = vmul.f32 %v1938_v13, %v2119_v27  ;;  %v669_v54 = vmul.f32 %v2119_v27, %v595_v19  ;;  %v760_v36 = vpack.c.bf16 %v737_v26, %v736_v5 }
 0x120   : > { %1298 = vrot.lane.b32.xlu1 %v2255_v18, %s2007_s21  ;;  %v2276_v14 = vsel %vm474_vm0, %v1208_v6, %v1209_v21  ;;  %v1009_v37 = vrot.slane %v1007_v31, 1  ;;  %v1211_v38 = vrot.slane %v2188_v55, 1  ;;  %v1014_v40 = vrot.slane %v1012_v34, 1 }
 0x121   : > { %v832_v39 = vshrl.u32 %v761_v33, 16  ;;  %v710_v41 = vadd.f32 %v2124_v29, %v671_v35  ;;  %v1212_v42 = vrot.slane %v2179_v49, 1  ;;  %v825_v43 = vshrl.u32 %v760_v36, 16 }
 0x122   : > { %v828_v44 = vshll.u32 %v760_v36, 16  ;;  %v1010_v45 = vor.u32 %v1009_v37, %v1005_v28  ;;  %v708_v46 = vadd.f32 %v2124_v29, %v669_v54  ;;  %v835_v51 = vshll.u32 %v761_v33, 16 }
 0x123   : > { %v2282_v48 = vrot.slane %v832_v39, 7  ;;  %v742_v52 = vmax.f32 %v710_v41, 0.0  ;;  %v936_v53 = vsel %vm2138_vm5, %v2206_v8, 0  ;;  %v2287_v59 = vpop.f32.mrb[24].mxu0  ;;  %v2289_v60 = vrot.slane %v825_v43, 7 }
 0x124   : > { %1300 = vrot.lane.b32.xlu1 %v2276_v14, %s2007_s21  ;;  %v2294_v49 = vsel %vm947_vm6, %v1010_v45, %v1014_v40  ;;  %v740_v61 = vmax.f32 %v708_v46, 0.0  ;;  %v2297_v63 = vsel %vm474_vm0, %v1211_v38, %v1212_v42  ;;  %v2299_v1 = vpop.f32.mrb[25].mxu0  ;;  %v1017_v8 = vshrl.u32 %v2221_v30, 16 }
 0x125   : > { %1146 = vrot.lane.b32.xlu0 %v2294_v49, %s2007_s21  ;;  %v1019_v3 = vshll.u32 %v2221_v30, 16  ;;  %v1024_v4 = vshll.u32 %v936_v53, 16  ;;  %v672_v5 = vmul.f32 %v1939_v24, %v2119_v27  ;;  %v2306_v10 = vpop.f32.mrb[26].mxu0  ;;  %v830_v13 = vor.u32 %v828_v44, %v2289_v60 }
 0x126   : > { %v670_v15 = vmul.f32 %v2119_v27, %v598_v32  ;;  %v1214_v16 = vrot.slane %v2233_v50, 1  ;;  %v1215_v6 = vrot.slane %v935_v23, 1  ;;  %v2311_v19 = vpop.f32.mrb[27].mxu0  ;;  %v837_v22 = vor.u32 %v835_v51, %v2282_v48 }
 0x127   : > { %v1021_v21 = vrot.slane %v1019_v3, 1  ;;  %v1026_v26 = vrot.slane %v1024_v4, 1  ;;  %v711_v28 = vadd.f32 %v2124_v29, %v672_v5  ;;  %v2317_v24 = vsel %vm2138_vm5, 0, %v830_v13 }
 0x128   : > { %1302 = vrot.lane.b32.xlu1 %v2297_v63, %s2007_s21  ;;  %v709_v31 = vadd.f32 %v2124_v29, %v670_v15  ;;  %v2323_v32 = vsel %vm474_vm0, %v1214_v16, %v1215_v6  ;;  %v937_v23 = vsel %vm2138_vm5, %v2240_v62, 0  ;;  %v1029_v35 = vshrl.u32 %v2267_v25, 16 }
 0x129   : > { %v1022_v33 = vor.u32 %v1021_v21, %v1017_v8  ;;  %v743_v34 = vmax.f32 %v711_v28, 0.0  ;;  %v1031_v54 = vshll.u32 %v2267_v25, 16  ;;  %v1036_v37 = vshll.u32 %v937_v23, 16 }
 0x12a   : > { %v741_v36 = vmax.f32 %v709_v31, 0.0  ;;  %v1217_v38 = vrot.slane %v2221_v30, 1  ;;  %v1218_v39 = vrot.slane %v936_v53, 1  ;;  %v938_v62 = vsel %vm2138_vm5, %v2237_v58, 0 }
 0x12b   : > { %v2332_v40 = vsel %vm947_vm6, %v1022_v33, %v1026_v26  ;;  %v763_v41 = vpack.c.bf16 %v743_v34, %v742_v52  ;;  %v1033_v42 = vrot.slane %v1031_v54, 1  ;;  %v2337_v43 = vpop.f32.mrb[28].mxu0  ;;  %v1038_v45 = vrot.slane %v1036_v37, 1 }
 0x12c   : > { %1148 = vrot.lane.b32.xlu0 %v2332_v40, %s2007_s21  ;;  %v762_v44 = vpack.c.bf16 %v741_v36, %v740_v61  ;;  %1304 = vrot.lane.b32.xlu1 %v2323_v32, %s2007_s21  ;;  %v2344_v46 = vsel %vm474_vm0, %v1217_v38, %v1218_v39  ;;  %v1041_v51 = vshrl.u32 %v2260_v20, 16  ;;  %v2347_v52 = vpop.f32.mrb[29].mxu0  ;;  %v1043_v3 = vshll.u32 %v2260_v20, 16 }
 0x12d   : > { %v846_v53 = vshrl.u32 %v763_v41, 16  ;;  %v849_v8 = vshll.u32 %v763_v41, 16  ;;  %v1034_v58 = vor.u32 %v1033_v42, %v1029_v35  ;;  %v2350_v4 = vpop.f32.mrb[30].mxu0  ;;  %v1048_v13 = vshll.u32 %v938_v62, 16 }
 0x12e   : > { %v839_v5 = vshrl.u32 %v762_v44, 16  ;;  %v842_v61 = vshll.u32 %v762_v44, 16  ;;  %v1220_v15 = vrot.slane %v2267_v25, 1  ;;  %v2353_v16 = vpop.f32.mrb[31].mxu0  ;;  %v1045_v26 = vrot.slane %v1043_v3, 1 }
 0x12f   : > { %v2355_v6 = vrot.slane %v846_v53, 7  ;;  %v2358_v21 = vsel %vm947_vm6, %v1034_v58, %v1038_v45  ;;  %v1221_v28 = vrot.slane %v937_v23, 1  ;;  %v1050_v33 = vrot.slane %v1048_v13, 1 }
 0x130   : > { %v841_v31 = vrot.slane %v839_v5, 7  ;;  %1150 = vrot.lane.b32.xlu0 %v2358_v21, %s2007_s21  ;;  %1306 = vrot.lane.b32.xlu1 %v2344_v46, %s2007_s21  ;;  %v939_v34 = vsel %vm2138_vm5, %v2289_v60, 0  ;;  %v1053_v35 = vshrl.u32 %v2317_v24, 16  ;;  %v1046_v36 = vor.u32 %v1045_v26, %v1041_v51 }
 0x131   : > { %v851_v54 = vor.u32 %v849_v8, %v2355_v6  ;;  %v2370_v37 = vsel %vm474_vm0, %v1220_v15, %v1221_v28  ;;  %v1055_v23 = vshll.u32 %v2317_v24, 16  ;;  %v1060_v39 = vshll.u32 %v939_v34, 16 }
 0x132   : > { %v844_v38 = vor.u32 %v842_v61, %v841_v31  ;;  %v675_v41 = vmul.f32 %v2287_v59, %v2119_v27  ;;  %v673_v42 = vmul.f32 %v2119_v27, %v2299_v1  ;;  %v2379_v60 = vsel %vm2138_vm5, 0, %v837_v22 }
 0x133   : > { %v2382_v44 = vsel %vm947_vm6, %v1046_v36, %v1050_v33  ;;  %v1057_v45 = vrot.slane %v1055_v23, 1  ;;  %v1223_v51 = vrot.slane %v2260_v20, 1  ;;  %v2387_v53 = vsel %vm2138_vm5, 0, %v851_v54 }
 0x134   : > { %v2391_v59 = vsel %vm2138_vm5, 0, %v844_v38  ;;  %1152 = vrot.lane.b32.xlu0 %v2382_v44, %s2007_s21  ;;  %1308 = vrot.lane.b32.xlu1 %v2370_v37, %s2007_s21  ;;  %v1062_v1 = vrot.slane %v1060_v39, 1  ;;  %v714_v22 = vadd.f32 %v2124_v29, %v675_v41  ;;  %v712_v58 = vadd.f32 %v2124_v29, %v673_v42 }
 0x135   : > { %v1058_v8 = vor.u32 %v1057_v45, %v1053_v35  ;;  %v1224_v3 = vrot.slane %v938_v62, 1  ;;  %v2402_v5 = vsel %vm2138_vm5, %v2282_v48, 0  ;;  %v1065_v13 = vshrl.u32 %v2379_v60, 16 }
 0x136   : > { %v746_v61 = vmax.f32 %v714_v22, 0.0  ;;  %v1067_v15 = vshll.u32 %v2379_v60, 16  ;;  %v1072_v26 = vshll.u32 %v2402_v5, 16  ;;  %v676_v62 = vmul.f32 %v2306_v10, %v2119_v27 }
 0x137   : > { %v2408_v28 = vsel %vm947_vm6, %v1058_v8, %v1062_v1  ;;  %v2411_v33 = vsel %vm474_vm0, %v1223_v51, %v1224_v3  ;;  %v674_v48 = vmul.f32 %v2119_v27, %v2311_v19  ;;  %v1226_v36 = vrot.slane %v2317_v24, 1 }
 0x138   : > { %1154 = vrot.lane.b32.xlu0 %v2408_v28, %s2007_s21  ;;  %1310 = vrot.lane.b32.xlu1 %v2411_v33, %s2007_s21  ;;  %v1069_v35 = vrot.slane %v1067_v15, 1  ;;  %v1074_v54 = vrot.slane %v1072_v26, 1  ;;  %v1227_v23 = vrot.slane %v939_v34, 1  ;;  %v744_v38 = vmax.f32 %v712_v58, 0.0 }
 0x139   : > { %v715_v39 = vadd.f32 %v2124_v29, %v676_v62  ;;  %v713_v41 = vadd.f32 %v2124_v29, %v674_v48  ;;  %v2426_v10 = vsel %vm2138_vm5, %v841_v31, 0  ;;  %v1077_v42 = vshrl.u32 %v2391_v59, 16 }
 0x13a   : > { %v1070_v19 = vor.u32 %v1069_v35, %v1065_v13  ;;  %v1079_v45 = vshll.u32 %v2391_v59, 16  ;;  %v1084_v51 = vshll.u32 %v2426_v10, 16  ;;  %v2432_v34 = vsel %vm474_vm0, %v1226_v36, %v1227_v23 }
 0x13b   : > { %v747_v1 = vmax.f32 %v715_v39, 0.0  ;;  %v745_v22 = vmax.f32 %v713_v41, 0.0  ;;  %v679_v8 = vmul.f32 %v2337_v43, %v2119_v27  ;;  %v677_v13 = vmul.f32 %v2119_v27, %v2347_v52 }
 0x13c   : > { %v2437_v58 = vsel %vm947_vm6, %v1070_v19, %v1074_v54  ;;  %1248 = vrot.lane.b32.xlu1 %v2164_v17, %s2007_s21  ;;  %v1081_v31 = vrot.slane %v1079_v45, 1  ;;  %v1086_v3 = vrot.slane %v1084_v51, 1  ;;  %v957_v43 = vshrl.u32 %v2164_v17, 16 }
 0x13d   : > { %1156 = vrot.lane.b32.xlu0 %v2437_v58, %s2007_s21  ;;  %v765_v15 = vpack.c.bf16 %v747_v1, %v746_v61  ;;  %v764_v26 = vpack.c.bf16 %v745_v22, %v744_v38  ;;  %v718_v62 = vadd.f32 %v2124_v29, %v679_v8  ;;  %v959_v35 = vshll.u32 %v2164_v17, 16 }
 0x13e   : > { %v1082_v48 = vor.u32 %v1081_v31, %v1077_v42  ;;  %v964_v54 = vshll.u32 %v2154_v11, 16  ;;  %v680_v36 = vmul.f32 %v2350_v4, %v2119_v27  ;;  %v716_v19 = vadd.f32 %v2124_v29, %v677_v13 }
 0x13f   : > { %v860_v23 = vshrl.u32 %v765_v15, 16  ;;  %v863_v39 = vshll.u32 %v765_v15, 16  ;;  %v853_v52 = vshrl.u32 %v764_v26, 16  ;;  %v856_v41 = vshll.u32 %v764_v26, 16 }
 0x140   : > { %1136 = vrot.lane.b32.xlu1 %v2146_v2, %s2007_s21  ;;  %v2454_v61 = vsel %vm947_vm6, %v1082_v48, %v1086_v3  ;;  %v750_v38 = vmax.f32 %v718_v62, 0.0  ;;  %v961_v42 = vrot.slane %v959_v35, 1  ;;  %v966_v11 = vrot.slane %v964_v54, 1 }
 0x141   : > { %v862_v45 = vrot.slane %v860_v23, 7  ;;  %v855_v51 = vrot.slane %v853_v52, 7  ;;  %1312 = vrot.lane.b32.xlu0 %v2432_v34, %s2007_s21  ;;  %v719_v4 = vadd.f32 %v2124_v29, %v680_v36  ;;  %v678_v22 = vmul.f32 %v2119_v27, %v2353_v16 }
 0x142   : > { %v962_v1 = vor.u32 %v961_v42, %v957_v43  ;;  %v1229_v8 = vrot.slane %v2379_v60, 1  ;;  %v1230_v31 = vrot.slane %v2402_v5, 1  ;;  %v942_v26 = vsel %vm2138_vm5, %v2355_v6, 0 }
 0x143   : > { %v865_v3 = vor.u32 %v863_v39, %v862_v45  ;;  %v858_v15 = vor.u32 %v856_v41, %v855_v51  ;;  %v751_v13 = vmax.f32 %v719_v4, 0.0  ;;  %v748_v62 = vmax.f32 %v716_v19, 0.0 }
 0x144   : > { %1250 = vrot.lane.b32.xlu1 %v2158_v12, %s2007_s21  ;;  %v717_v43 = vadd.f32 %v2124_v29, %v678_v22  ;;  %v2473_v27 = vsel %vm947_vm6, %v962_v1, %v966_v11  ;;  %v1089_v5 = vshrl.u32 %v2387_v53, 16  ;;  %v1091_v48 = vshll.u32 %v2387_v53, 16 }
 0x145   : > { %1158 = vrot.lane.b32.xlu0 %v2454_v61, %s2007_s21  ;;  %v767_v16 = vpack.c.bf16 %v751_v13, %v750_v38  ;;  %v2479_v6 = vsel %vm2138_vm5, 0, %v858_v15  ;;  %v2482_v54 = vsel %vm474_vm0, %v1229_v8, %v1230_v31  ;;  %v1096_v29 = vshll.u32 %v942_v26, 16 }
 0x146   : > { %v749_v35 = vmax.f32 %v717_v43, 0.0  ;;  %v2486_v36 = vsel %vm2138_vm5, 0, %v865_v3  ;;  %v1093_v39 = vrot.slane %v1091_v48, 1  ;;  %v2490_v52 = vsel %vm2138_vm5, %v855_v51, 0 }
 0x147   : > { %v874_v23 = vshrl.u32 %v767_v16, 16  ;;  %v1098_v38 = vrot.slane %v1096_v29, 1  ;;  %v1232_v19 = vrot.slane %v2391_v59, 1  ;;  %v1233_v42 = vrot.slane %v2426_v10, 1 }
 0x148   : > { %v766_v41 = vpack.c.bf16 %v749_v35, %v748_v62  ;;  %1314 = vrot.lane.b32.xlu1 %v2482_v54, %s2007_s21  ;;  %v1094_v11 = vor.u32 %v1093_v39, %v1089_v5  ;;  %v1101_v4 = vshrl.u32 %v2479_v6, 16  ;;  %v1103_v1 = vshll.u32 %v2479_v6, 16 }
 0x149   : > { %1138 = vrot.lane.b32.xlu0 %v2473_v27, %s2007_s21  ;;  %v1108_v51 = vshll.u32 %v2490_v52, 16  ;;  %v876_v22 = vrot.slane %v874_v23, 7  ;;  %v877_v8 = vshll.u32 %v767_v16, 16  ;;  %v944_v10 = vsel %vm2138_vm5, %v862_v45, 0 }
 0x14a   : > { %v867_v31 = vshrl.u32 %v766_v41, 16  ;;  %v870_v3 = vshll.u32 %v766_v41, 16  ;;  %v2502_v15 = vsel %vm947_vm6, %v1094_v11, %v1098_v38  ;;  %v1105_v13 = vrot.slane %v1103_v1, 1 }
 0x14b   : > { %v1110_v62 = vrot.slane %v1108_v51, 1  ;;  %v2509_v5 = vsel %vm474_vm0, %v1232_v19, %v1233_v42  ;;  %v1115_v48 = vshll.u32 %v2486_v36, 16  ;;  %v1113_v35 = vshrl.u32 %v2486_v36, 16 }
 0x14c   : > { %v869_v43 = vrot.slane %v867_v31, 7  ;;  %1252 = vrot.lane.b32.xlu1 %v2192_v57, %s2007_s21  ;;  %v1106_v16 = vor.u32 %v1105_v13, %v1101_v4  ;;  %v1235_v29 = vrot.slane %v2387_v53, 1  ;;  %v1236_v23 = vrot.slane %v942_v26, 1 }
 0x14d   : > { %1160 = vrot.lane.b32.xlu0 %v2502_v15, %s2007_s21  ;;  %v879_v39 = vor.u32 %v877_v8, %v876_v22  ;;  %v1117_v41 = vrot.slane %v1115_v48, 1  ;;  %v1120_v38 = vshll.u32 %v944_v10, 16 }
 0x14e   : > { %v872_v45 = vor.u32 %v870_v3, %v869_v43  ;;  %v2517_v11 = vsel %vm947_vm6, %v1106_v16, %v1110_v62  ;;  %v945_v19 = vsel %vm2138_vm5, %v869_v43, 0  ;;  %v2530_v26 = vsel %vm474_vm0, %v1235_v29, %v1236_v23 }
 0x14f   : > { %v1132_v51 = vshll.u32 %v945_v19, 16  ;;  %v2536_v8 = vsel %vm2138_vm5, 0, %v879_v39  ;;  %v1118_v31 = vor.u32 %v1117_v41, %v1113_v35  ;;  %v1122_v3 = vrot.slane %v1120_v38, 1 }
 0x150   : > { %v2523_v42 = vsel %vm2138_vm5, 0, %v872_v45  ;;  %1162 = vrot.lane.b32.xlu1 %v2517_v11, %s2007_s21  ;;  %v1283_v48 = vshll.u32 %v2536_v8, 16  ;;  %v1238_v29 = vrot.slane %v2479_v6, 1  ;;  %v1239_v23 = vrot.slane %v2490_v52, 1 }
 0x151   : > { %1316 = vrot.lane.b32.xlu0 %v2509_v5, %s2007_s21  ;;  %v1125_v4 = vshrl.u32 %v2523_v42, 16  ;;  %v1127_v1 = vshll.u32 %v2523_v42, 16  ;;  %v1134_v43 = vrot.slane %v1132_v51, 1  ;;  %v2544_v16 = vsel %vm947_vm6, %v1118_v31, %v1122_v3 }
 0x152   : > { %v946_v35 = vsel %vm2138_vm5, %v876_v22, 0  ;;  %v1241_v39 = vrot.slane %v2486_v36, 1  ;;  %v1242_v45 = vrot.slane %v944_v10, 1  ;;  %v1281_v38 = vshrl.u32 %v2536_v8, 16 }
 0x153   : > { %v1129_v13 = vrot.slane %v1127_v1, 1  ;;  %v1288_v1 = vshll.u32 %v946_v35, 16  ;;  %v2560_v52 = vsel %vm474_vm0, %v1238_v29, %v1239_v23  ;;  %v1244_v31 = vrot.slane %v2523_v42, 1 }
 0x154   : > { %1318 = vrot.lane.b32.xlu1 %v2530_v26, %s2007_s21  ;;  %v2567_v56 = vsel %vm474_vm0, %v1241_v39, %v1242_v45  ;;  %v1245_v3 = vrot.slane %v945_v19, 1  ;;  %v2852_v39 = vlaneseq }
 0x155   : > { %1254 = vrot.lane.b32.xlu0 %v2188_v55, %s2007_s21  ;;  %v1130_v62 = vor.u32 %v1129_v13, %v1125_v4  ;;  %v1285_v4 = vrot.slane %v1283_v48, 1  ;;  %v1290_v10 = vrot.slane %v1288_v1, 1 }
 0x156   : > { %v2582_v13 = vsel %vm474_vm0, %v1244_v31, %v1245_v3 }
 0x157   : > { %v2556_v41 = vsel %vm947_vm6, %v1130_v62, %v1134_v43  ;;  %v1286_v22 = vor.u32 %v1285_v4, %v1281_v38  ;;  %v1293_v62 = vrot.slane %v2536_v8, 1  ;;  %v1294_v43 = vrot.slane %v946_v35, 1 }
 0x158   : > { %1256 = vrot.lane.b32.xlu1 %v2233_v50, %s2007_s21  ;;  %v2008_v38 = vmov 1966171168  }
 0x159   : > { %1164 = vrot.lane.b32.xlu0 %v2544_v16, %s2007_s21  ;;  %v2574_v51 = vsel %vm947_vm6, %v1286_v22, %v1290_v10  ;;  %v2590_v19 = vsel %vm474_vm0, %v1293_v62, %v1294_v43  ;;  %v1514_v4 = vunpack.c.l.s4 %v2008_v38  ;;  %v2622_v22 = vshrl.u32 %v2852_v39, 7 }
 0x15b   : > { %2856 = vst [vmem:[#allocation4_spill] sm:$0xff] %v2622_v22 }
 0x15c   : > { %1166 = vrot.lane.b32.xlu1 %v2556_v41, %s2007_s21 }
 0x15d   : > { %1320 = vrot.lane.b32.xlu0 %v2560_v52, %s2007_s21 }
 0x160   : > { %1322 = vrot.lane.b32.xlu1 %v2567_v56, %s2007_s21 }
 0x161   : > { %1258 = vrot.lane.b32.xlu0 %v2221_v30, %s2007_s21 }
 0x164   : > { %1328 = vrot.lane.b32.xlu1 %v2574_v51, %s2007_s21 }
 0x165   : > { %1260 = vrot.lane.b32.xlu0 %v2267_v25, %s2007_s21 }
 0x168   : > { %1262 = vrot.lane.b32.xlu1 %v2260_v20, %s2007_s21 }
 0x169   : > { %1324 = vrot.lane.b32.xlu0 %v2582_v13, %s2007_s21 }
 0x16c   : > { %1264 = vrot.lane.b32.xlu1 %v2317_v24, %s2007_s21 }
 0x16d   : > { %1326 = vrot.lane.b32.xlu0 %v2590_v19, %s2007_s21 }
 0x170   : > { %1268 = vrot.lane.b32.xlu1 %v2391_v59, %s2007_s21 }
 0x171   : > { %1266 = vrot.lane.b32.xlu0 %v2379_v60, %s2007_s21 }
 0x174   : > { %1272 = vrot.lane.b32.xlu1 %v2479_v6, %s2007_s21 }
 0x175   : > { %1270 = vrot.lane.b32.xlu0 %v2387_v53, %s2007_s21 }
 0x178   : > { %1276 = vrot.lane.b32.xlu1 %v2523_v42, %s2007_s21 }
 0x179   : > { %1274 = vrot.lane.b32.xlu0 %v2486_v36, %s2007_s21 }
 0x17d   : > { %1278 = vrot.lane.b32.xlu0 %v2536_v8, %s2007_s21 }
 0x180   : > { %v1141_v48 = vpop.permute.xlu0 %1140 }
 0x181   : > { %v2612_v29 = vsel %vm1330_vm7, %v2158_v12, %v1141_v48  ;;  %v1515_v12 = vunpack.c.0.s8 %v1514_v4 }
 0x182   : > { %1632 = vmatprep.subr.bf16.mxu1 %v2612_v29 }
 0x183   : > { %v2631_v3 = vsub.s32 %v1515_v12, %v2622_v22 }
 0x184   : > { %v1297_v23 = vpop.permute.xlu0 %1296 }
 0x185   : > { %v1445_v35 = vsel %vm1330_vm7, %v2473_v27, %v1297_v23  ;;  %v2628_v27 = vld [vmem:[%s2848_s4] sm:$0x1f] }
 0x186   : > { %1633 = vmatpush1.bf16.xpose.msra.mxu1 %v1445_v35  ;;  %v2641_v43 = vrot.slane %v2628_v27, %v2631_v3 }
 0x188   : > { %v1527_v23 = vcombine.high %v2641_v43, %v2641_v43 }
 0x18a   : > { %v1145_v10 = vpop.permute.xlu0 %1144 }
 0x18b   : > { %v2637_v62 = vsel %vm1330_vm7, %v2188_v55, %v1145_v10 }
 0x18e   : > { %v1143_v45 = vpop.permute.xlu1 %1142 }
 0x18f   : > { %v2619_v1 = vsel %vm1330_vm7, %v2192_v57, %v1143_v45  ;;  %v1548_v45 = vrot.slane %v1527_v23, %v2631_v3 }
 0x190   : > { %1634 = vmatprep.subr.bf16.mxu1 %v2619_v1 }
 0x191   : > { %1623 = vmatprep.mubr.bf16.mxu0 %v1548_v45 }
 0x192   : > { %v1299_v31 = vpop.permute.xlu1 %1298 }
 0x193   : > { %v1449_v57 = vsel %vm1330_vm7, %v2197_v0, %v1299_v31  ;;  %v1550_v0 = vcombine.high %v1548_v45, %v1548_v45 }
 0x194   : > { %1635 = vmatpush1.bf16.xpose.msra.mxu1 %v1449_v57 }
 0x195   : > { %1636 = vmatprep.subr.bf16.mxu1 %v2637_v62  ;;  %1664 = vmatprep.mubr.bf16.mxu1 %v1550_v0 }
 0x196   : > { %v1301_v48 = vpop.permute.xlu1 %1300 }
 0x197   : > { %v1147_v35 = vpop.permute.xlu0 %1146  ;;  %v1453_v55 = vsel %vm1330_vm7, %v2247_v9, %v1301_v48 }
 0x198   : > { %v2651_v4 = vsel %vm1330_vm7, %v2233_v50, %v1147_v35 }
 0x19a   : > { %v1303_v38 = vpop.permute.xlu1 %1302 }
 0x19b   : > { %v1457_v23 = vsel %vm1330_vm7, %v2228_v47, %v1303_v38 }
 0x19c   : > { %1637 = vmatpush1.bf16.xpose.msra.mxu1 %v1453_v55 }
 0x19d   : > { %1638 = vmatprep.subr.bf16.mxu1 %v2651_v4 }
 0x19e   : > { %v1149_v12 = vpop.permute.xlu0 %1148  ;;  %v1305_v10 = vpop.permute.xlu1 %1304 }
 0x19f   : > { %v2658_v45 = vsel %vm1330_vm7, %v2221_v30, %v1149_v12  ;;  %v1461_v0 = vsel %vm1330_vm7, %v2294_v49, %v1305_v10 }
 0x1a2   : > { %v1151_v31 = vpop.permute.xlu0 %1150  ;;  %v1307_v57 = vpop.permute.xlu1 %1306 }
 0x1a3   : > { %v2665_v55 = vsel %vm1330_vm7, %v2267_v25, %v1151_v31  ;;  %v1465_v25 = vsel %vm1330_vm7, %v2332_v40, %v1307_v57 }
 0x1a4   : > { %1639 = vmatpush1.bf16.xpose.msra.mxu1 %v1457_v23 }
 0x1a5   : > { %1640 = vmatprep.subr.bf16.mxu1 %v2658_v45 }
 0x1a6   : > { %v1153_v9 = vpop.permute.xlu0 %1152  ;;  %v1309_v50 = vpop.permute.xlu1 %1308 }
 0x1a7   : > { %v2684_v10 = vsel %vm1330_vm7, %v2260_v20, %v1153_v9  ;;  %v1469_v22 = vsel %vm1330_vm7, %v2358_v21, %v1309_v50 }
 0x1aa   : > { %v1155_v48 = vpop.permute.xlu0 %1154  ;;  %v1311_v35 = vpop.permute.xlu1 %1310 }
 0x1ab   : > { %v2695_v20 = vsel %vm1330_vm7, %v2317_v24, %v1155_v48  ;;  %v1473_v21 = vsel %vm1330_vm7, %v2382_v44, %v1311_v35 }
 0x1ac   : > { %1641 = vmatpush1.bf16.xpose.msra.mxu1 %v1461_v0 }
 0x1ad   : > { %1642 = vmatprep.subr.bf16.mxu1 %v2665_v55 }
 0x1ae   : > { %v1249_v47 = vpop.permute.xlu1 %1248 }
 0x1af   : > { %v1157_v38 = vpop.permute.xlu0 %1156  ;;  %v1381_v30 = vsel %vm1330_vm7, %v2146_v2, %v1249_v47 }
 0x1b0   : > { %1591 = vmatprep.subr.bf16.mxu0 %v1381_v30 }
 0x1b2   : > { %v2675_v23 = vpop.permute.xlu1 %1136 }
 0x1b3   : > { %v1313_v49 = vpop.permute.xlu0 %1312  ;;  %1863 = vmatpush1.bf16.xpose.msk.msra.mxu0 %vm2671_vm8, %v2675_v23 }
 0x1b4   : > { %1643 = vmatpush1.bf16.xpose.msra.mxu1 %v1465_v25  ;;  %v1477_v35 = vsel %vm1330_vm7, %v2408_v28, %v1313_v49 }
 0x1b5   : > { %1644 = vmatprep.subr.bf16.mxu1 %v2684_v10 }
 0x1b6   : > { %v1251_v31 = vpop.permute.xlu1 %1250 }
 0x1b7   : > { %v1159_v0 = vpop.permute.xlu0 %1158  ;;  %v1385_v47 = vsel %vm1330_vm7, %v2204_v7, %v1251_v31 }
 0x1b8   : > { %1593 = vmatprep.subr.bf16.mxu0 %v1385_v47 }
 0x1ba   : > { %v1315_v30 = vpop.permute.xlu1 %1314 }
 0x1bb   : > { %v1139_v39 = vpop.permute.xlu0 %1138  ;;  %v1481_v28 = vsel %vm1330_vm7, %v2437_v58, %v1315_v30 }
 0x1bc   : > { %v1335_v40 = vsel %vm1330_vm7, %v2164_v17, %v1139_v39  ;;  %1645 = vmatpush1.bf16.xpose.msra.mxu1 %v1469_v22  ;;  %v2704_v17 = vsel %vm1330_vm7, %v2379_v60, %v1157_v38  ;;  %v1714_v60 = vld [vmem:[#allocation2] sm:$0x1]  ;;  %v1726_v38 = vld [vmem:[#allocation3] sm:$0x1] }
 0x1bd   : > { %1594 = vmatpush1.bf16.xpose.msra.mxu0 %v1335_v40  ;;  %1646 = vmatprep.subr.bf16.mxu1 %v2695_v20 }
 0x1be   : > { %v1253_v57 = vpop.permute.xlu1 %1252  ;;  %1717 = vperm.xlu1 %1974, %v1714_v60   ;;  %1729 = vperm.xlu0 %1975, %v1726_v38   ;;  %v2859_v38 = vld [vmem:[#allocation4_spill] sm:$0xff] }
 0x1bf   : > { %v1161_v9 = vpop.permute.xlu0 %1160  ;;  %v1389_v7 = vsel %vm1330_vm7, %v2255_v18, %v1253_v57 }
 0x1c0   : > { %1595 = vmatprep.subr.bf16.mxu0 %v1389_v7  ;;  %v2724_v49 = vsel %vm1330_vm7, %v2387_v53, %v1161_v9 }
 0x1c2   : > { %v1163_v25 = vpop.permute.xlu1 %1162 }
 0x1c3   : > { %v1317_v31 = vpop.permute.xlu0 %1316  ;;  %v2734_v58 = vsel %vm1330_vm7, %v2479_v6, %v1163_v25 }
 0x1c4   : > { %1647 = vmatpush1.bf16.xpose.msra.mxu1 %v1473_v21  ;;  %v1485_v7 = vsel %vm1330_vm7, %v2454_v61, %v1317_v31 }
 0x1c5   : > { %1596 = vmatpush1.bf16.xpose.msra.mxu0 %v2612_v29  ;;  %1648 = vmatprep.subr.bf16.mxu1 %v2704_v17  ;;  %v2716_v29 = vsel %vm1330_vm7, %v2391_v59, %v1159_v0 }
 0x1c6   : > { %v1319_v24 = vpop.permute.xlu1 %1318 }
 0x1c7   : > { %v1255_v39 = vpop.permute.xlu0 %1254  ;;  %v1489_v30 = vsel %vm1330_vm7, %v2502_v15, %v1319_v24 }
 0x1c8   : > { %v1393_v22 = vsel %vm1330_vm7, %v2276_v14, %v1255_v39 }
 0x1c9   : > { %1597 = vmatprep.subr.bf16.mxu0 %v1393_v22 }
 0x1ca   : > { %v1257_v50 = vpop.permute.xlu1 %1256 }
 0x1cb   : > { %v1165_v48 = vpop.permute.xlu0 %1164  ;;  %v1397_v44 = vsel %vm1330_vm7, %v2297_v63, %v1257_v50 }
 0x1cc   : > { %1649 = vmatpush1.bf16.xpose.msra.mxu1 %v1477_v35  ;;  %v2744_v61 = vsel %vm1330_vm7, %v2486_v36, %v1165_v48  ;;  %v1564_v35 = vsel %vm1330_vm7, %v2323_v32, 0 }
 0x1cd   : > { %1598 = vmatpush1.bf16.xpose.msra.mxu0 %v2619_v1  ;;  %1650 = vmatprep.subr.bf16.mxu1 %v2716_v29 }
 0x1ce   : > { %1599 = vmatprep.subr.bf16.mxu0 %v1397_v44  ;;  %v1167_v40 = vpop.permute.xlu1 %1166  ;;  %v1562_v44 = vsel %vm1330_vm7, %v2297_v63, 0 }
 0x1cf   : > { %v1321_v47 = vpop.permute.xlu0 %1320  ;;  %v2754_v15 = vsel %vm1330_vm7, %v2523_v42, %v1167_v40 }
 0x1d0   : > { %v1493_v25 = vsel %vm1330_vm7, %v2517_v11, %v1321_v47 }
 0x1d2   : > { %v1323_v1 = vpop.permute.xlu1 %1322 }
 0x1d3   : > { %v1259_v57 = vpop.permute.xlu0 %1258  ;;  %v1497_v24 = vsel %vm1330_vm7, %v2544_v16, %v1323_v1 }
 0x1d4   : > { %1651 = vmatpush1.bf16.xpose.msra.mxu1 %v1481_v28  ;;  %v1401_v59 = vsel %vm1330_vm7, %v2323_v32, %v1259_v57  ;;  %v1568_v32 = vsel %vm1330_vm7, %v2370_v37, 0 }
 0x1d5   : > { %1600 = vmatpush1.bf16.xpose.msra.mxu0 %v2637_v62  ;;  %1652 = vmatprep.subr.bf16.mxu1 %v2724_v49 }
 0x1d6   : > { %1601 = vmatprep.subr.bf16.mxu0 %v1401_v59  ;;  %v1329_v21 = vpop.permute.xlu1 %1328 }
 0x1d7   : > { %v1261_v0 = vpop.permute.xlu0 %1260  ;;  %v1508_v11 = vsel %vm1330_vm7, %v2536_v8, %v1329_v21  ;;  %v1512_v8 = vcombine.high %v2628_v27, %v2628_v27 }
 0x1d8   : > { %v1405_v53 = vsel %vm1330_vm7, %v2344_v46, %v1261_v0 }
 0x1da   : > { %v1263_v62 = vpop.permute.xlu1 %1262 }
 0x1db   : > { %v1409_v6 = vsel %vm1330_vm7, %v2370_v37, %v1263_v62 }
 0x1dc   : > { %1653 = vmatpush1.bf16.xpose.msra.mxu1 %v1485_v7 }
 0x1dd   : > { %1602 = vmatpush1.bf16.xpose.msra.mxu0 %v2651_v4  ;;  %1654 = vmatprep.subr.bf16.mxu1 %v2734_v58  ;;  %v1325_v4 = vpop.permute.xlu0 %1324 }
 0x1de   : > { %1603 = vmatprep.subr.bf16.mxu0 %v1405_v53  ;;  %v1265_v9 = vpop.permute.xlu1 %1264  ;;  %v1501_v39 = vsel %vm1330_vm7, %v2556_v41, %v1325_v4  ;;  %v1534_v41 = vrot.slane %v2641_v43, %v2631_v3 }
 0x1df   : > { %v1413_v36 = vsel %vm1330_vm7, %v2411_v33, %v1265_v9 }
 0x1e0   : > { %v1549_v27 = vcombine.high %v1534_v41, %v1534_v41 }
 0x1e1   : > { %v1327_v31 = vpop.permute.xlu0 %1326 }
 0x1e2   : > { %v1505_v22 = vsel %vm1330_vm7, %v2574_v51, %v1327_v31  ;;  %v1558_v51 = vsel %vm1330_vm7, %v2255_v18, 0 }
 0x1e4   : > { %1655 = vmatpush1.bf16.xpose.msra.mxu1 %v1489_v30 }
 0x1e5   : > { %1604 = vmatpush1.bf16.xpose.msra.mxu0 %v2658_v45  ;;  %1656 = vmatprep.subr.bf16.mxu1 %v2744_v61  ;;  %v1267_v45 = vpop.permute.xlu0 %1266 }
 0x1e6   : > { %1605 = vmatprep.subr.bf16.mxu0 %v1409_v6  ;;  %v1417_v42 = vsel %vm1330_vm7, %v2432_v34, %v1267_v45 }
 0x1ec   : > { %1657 = vmatpush1.bf16.xpose.msra.mxu1 %v1493_v25 }
 0x1ed   : > { %1606 = vmatpush1.bf16.xpose.msra.mxu0 %v2665_v55  ;;  %1658 = vmatprep.subr.bf16.mxu1 %v2754_v15  ;;  %v1269_v55 = vpop.permute.xlu1 %1268 }
 0x1ee   : > { %1607 = vmatprep.subr.bf16.mxu0 %v1413_v36  ;;  %v1421_v16 = vsel %vm1330_vm7, %v2482_v54, %v1269_v55 }
 0x1f1   : > { %v1273_v50 = vpop.permute.xlu1 %1272 }
 0x1f2   : > { %v1429_v43 = vsel %vm1330_vm7, %v2530_v26, %v1273_v50 }
 0x1f4   : > { %1659 = vmatpush1.bf16.xpose.msra.mxu1 %v1497_v24 }
 0x1f5   : > { %1608 = vmatpush1.bf16.xpose.msra.mxu0 %v2684_v10  ;;  %1660 = vmatprep.subr.bf16.mxu1 %v1508_v11  ;;  %v1271_v10 = vpop.permute.xlu0 %1270  ;;  %v1277_v48 = vpop.permute.xlu1 %1276 }
 0x1f6   : > { %1609 = vmatprep.subr.bf16.mxu0 %v1417_v42  ;;  %v1425_v12 = vsel %vm1330_vm7, %v2509_v5, %v1271_v10 }
 0x1fc   : > { %1661 = vmatpush1.bf16.xpose.msra.mxu1 %v1501_v39 }
 0x1fd   : > { %1610 = vmatpush1.bf16.xpose.msra.mxu0 %v2695_v20  ;;  %1865 = vmatprep.subr.msk.bf16.mxu1 %vm2671_vm8, %v2675_v23  ;;  %v1526_v20 = vrot.slane %v1512_v8, %v2631_v3 }
 0x1fe   : > { %1611 = vmatprep.subr.bf16.mxu0 %v1421_v16 }
 0x1ff   : > { %v1541_v23 = vrot.slane %v1526_v20, %v2631_v3 }
 0x204   : > { %1663 = vmatpush1.bf16.xpose.msra.mxu1 %v1505_v22 }
 0x205   : > { %1612 = vmatpush1.bf16.xpose.msra.mxu0 %v2704_v17  ;;  %1954 = vmatprep.subr.msk.bf16.mxu1 %vm1330_vm7, %v2482_v54  ;;  %v1275_v54 = vpop.permute.xlu0 %1274  ;;  %v1560_v17 = vsel %vm1330_vm7, %v2276_v14, 0  ;;  %v1437_v14 = vsel %vm1330_vm7, %v2567_v56, %v1277_v48 }
 0x206   : > { %1613 = vmatprep.subr.bf16.mxu0 %v1425_v12  ;;  %v1433_v18 = vsel %vm1330_vm7, %v2560_v52, %v1275_v54 }
 0x20b   : > { %1665 = vmatmul.mubr.bf16.vlgmr.msra.gmra.mrb[0].mxu1 %v1549_v27 }
 0x20c   : > { %1891 = vmatpush3.bf16.xpose.msra.mxu1 %v1558_v51  ;;  %1906 = vmatprep.mubr.msk.bf16.mxu1 %vm1330_vm7, %v1541_v23 }
 0x20d   : > { %1614 = vmatpush1.bf16.xpose.msra.mxu0 %v2716_v29  ;;  %1955 = vmatprep.subr.msk.bf16.mxu1 %vm1330_vm7, %v2509_v5  ;;  %v1279_v5 = vpop.permute.xlu0 %1278  ;;  %v1722_v29 = vsub.s32 0, %v2859_v38 }
 0x20e   : > { %1615 = vmatprep.subr.bf16.mxu0 %v1429_v43  ;;  %v1441_v63 = vsel %vm1330_vm7, %v2582_v13, %v1279_v5 }
 0x214   : > { %1893 = vmatpush3.bf16.xpose.msra.mxu1 %v1560_v17 }
 0x215   : > { %1616 = vmatpush1.bf16.xpose.msra.mxu0 %v2724_v49  ;;  %1956 = vmatprep.subr.msk.bf16.mxu1 %vm1330_vm7, %v2530_v26  ;;  %v1566_v26 = vsel %vm1330_vm7, %v2344_v46, 0  ;;  %v1572_v46 = vsel %vm1330_vm7, %v2432_v34, 0 }
 0x216   : > { %1617 = vmatprep.subr.bf16.mxu0 %v1433_v18 }
 0x21c   : > { %1895 = vmatpush3.bf16.xpose.msra.mxu1 %v1562_v44 }
 0x21d   : > { %1618 = vmatpush1.bf16.xpose.msra.mxu0 %v2734_v58  ;;  %1957 = vmatprep.subr.msk.bf16.mxu1 %vm1330_vm7, %v2560_v52  ;;  %v1570_v52 = vsel %vm1330_vm7, %v2411_v33, 0 }
 0x21e   : > { %1619 = vmatprep.subr.bf16.mxu0 %v1437_v14 }
 0x224   : > { %1897 = vmatpush3.bf16.xpose.msra.mxu1 %v1564_v35 }
 0x225   : > { %1620 = vmatpush1.bf16.xpose.msra.mxu0 %v2744_v61  ;;  %1958 = vmatprep.subr.msk.bf16.mxu1 %vm1330_vm7, %v2567_v56  ;;  %v2860_v61 = vlaneseq }
 0x226   : > { %1621 = vmatprep.subr.bf16.mxu0 %v1441_v63 }
 0x227   : > { %vm1760_vm9 = vcmp.lt.s32.totalorder %v2860_v61, 256 }
 0x22c   : > { %1899 = vmatpush3.bf16.xpose.msra.mxu1 %v1566_v26 }
 0x22d   : > { %1622 = vmatpush1.bf16.xpose.msra.mxu0 %v2754_v15  ;;  %1959 = vmatprep.subr.msk.bf16.mxu1 %vm1330_vm7, %v2582_v13 }
 0x234   : > { %1901 = vmatpush3.bf16.xpose.msra.mxu1 %v1568_v32  ;;  %1624 = vmatmul.mubr.bf16.vlgmr.msra.gmra.mrb[32].mxu0 %v1534_v41 }
 0x235   : > { %1960 = vmatprep.subr.msk.bf16.mxu1 %vm1330_vm7, %v2590_v19 }
 0x23c   : > { %1903 = vmatpush3.bf16.xpose.msra.mxu1 %v1570_v52 }
 0x23d   : > { %1961 = vmatprep.subr.msk.bf16.mxu1 %vm1330_vm7, %v2146_v2  ;;  %v1718_v19 = vpop.permute.xlu1 %1717  ;;  %v1730_v47 = vpop.permute.xlu0 %1729 }
 0x23e   : > { %v1723_v33 = vrot.slane %v1718_v19, %v1722_v29  ;;  %v1735_v2 = vrot.slane %v1730_v47, %v1722_v29 }
 0x244   : > { %1905 = vmatpush3.bf16.xpose.msra.mxu1 %v1572_v46 }
 0x24b   : > { %1907 = vmatmul.mubr.msk.bf16.vlgmr.msra.gmra.mrb[0].mxu1 %vm1330_vm7, %v1541_v23 }
 0x307   : > { %v1625_v56 = vpop.f32.mrb[32].mxu0 }
 0x308   : > { %v1627_v37 = vpop.f32.mrb[33].mxu0 }
 0x309   : > { %v1629_v13 = vpop.f32.mrb[34].mxu0 }
 0x30a   : > { %v1630_v60 = vpop.f32.mrb[35].mxu0 }
 0x31e   : > { %v1707_v40 = vpop.f32.mrb[0].mxu1 }
 0x31f   : > { %v1948_v57 = vadd.f32 %v1707_v40, %v1625_v56  ;;  %v1709_v28 = vpop.f32.mrb[1].mxu1 }
 0x320   : > { %v1949_v49 = vadd.f32 %v1709_v28, %v1627_v37  ;;  %v1711_v59 = vpop.f32.mrb[2].mxu1 }
 0x321   : > { %v1724_v34 = vmul.f32 %v1948_v57, %v1723_v33  ;;  %v1712_v1 = vpop.f32.mrb[3].mxu1 }
 0x322   : > { %v1725_v0 = vmul.f32 %v1949_v49, %v1723_v33 }
 0x323   : > { %v1736_v7 = vadd.f32 %v1735_v2, %v1724_v34 }
 0x324   : > { %v1737_v21 = vadd.f32 %v1735_v2, %v1725_v0 }
 0x325   : > { %v1738_v58 = vmax.f32 %v1736_v7, 0.0 }
 0x326   : > { %v1739_v53 = vmax.f32 %v1737_v21, 0.0 }
 0x328   : > { %v1742_v62 = vcombine.low %v1738_v58, %v1739_v53 }
 0x32a   : > { %v1749_v30 = vrot.slane %v1742_v62, %v2631_v3 }
 0x32c   : > { %v1756_v6 = vrot.slane %v1749_v30, %v2631_v3 }
 0x32e   : > { %1762 = vst.msk [vmem:[%s280_s27] sm:$0x3] %vm1760_vm9, %v1756_v6 }
 0x32f PF: > { %s21_s28 = sadd.s32 1, %s2003_s28  }
 0x330   : > { %p18_p4 = scmp.ge.s32.totalorder %s21_s28, 4  }
 0x332   :  { %20 = sbr.rel (!%p18_p4) target bundleno = 3 (0x3), region = 78 }

</bundles_post_ra>
